<compile_context>
chip_gen: v6e
topology: v6e:2x2x1
jax: 0.10.0
libtpu: 0.0.40
codegen_flags: <defaults>
</compile_context>

<pallas_src>
import jax
import jax.numpy as jnp
from jax.experimental import pallas as pl
from jax.experimental.pallas import tpu as pltpu


def _copy_kernel(x_ref, o_ref):
    # Pure materialization of one lane/sublane-dense (row_tile, cols) tile.
    o_ref[...] = x_ref[...]


_LANE = 128
_MAX_COLS = 2048       # lane-dense slab width cap (multiple of 128)
_MAX_ROW_TILE = 256    # sublane rows per block; 256 x 2048 f32 = 2 MiB per block
                       # -> 2 bufs x (in + out) = 8 MiB, well under scoped VMEM
                       #    defaults on v5e/v6e (32 MiB) and v7x (32 MiB).


def _pick_slab(total: int):
    """Pick a (rows, cols, row_tile) lane/sublane-dense 2D view of `total` elements.

    Returns None when `total` is not a multiple of 128 lanes (no kernel copy then).
    """
    if total % _LANE != 0:
        return None

    # Widest lane dimension whose row count is a multiple of 8 (unmasked vst),
    # falling back to any multiple-of-128 divisor.
    cols = None
    for c in (_MAX_COLS, 1024, 512, 256, 128):
        if total % c == 0 and (total // c) % 8 == 0:
            cols = c
            break
    if cols is None:
        for c in (_MAX_COLS, 1024, 512, 256, 128):
            if total % c == 0:
                cols = c
                break
    rows = total // cols

    # Largest row tile (multiple of 8, capped) that divides rows; otherwise use
    # the full row extent (allowed: block dim == full array dim).
    row_tile = rows
    for t in (256, 128, 64, 32, 16, 8):
        if t <= _MAX_ROW_TILE and rows % t == 0:
            row_tile = t
            break

    # Prefer >= 2 grid steps so v7x's 2 TensorCores both get work (halving keeps
    # the row tile a multiple of 8).
    if rows // row_tile == 1 and row_tile % 16 == 0:
        row_tile //= 2

    return rows, cols, row_tile


class BaseFusionHeadPallas:
    """JAX/Pallas port of BaseFusionHead.

    `forward` is abstract in the reference module, so only the concrete
    `flatten` utility is implemented here.
    """

    def __init__(self, feature_dim: int):
        self.feature_dim = feature_dim  # stored, no parameters to initialize

    # TODO(synk): forward() is @abstractmethod in the PyTorch module (no body to translate).

    def flatten(self, x: jax.Array) -> jax.Array:
        """x: (B, ...) -> (B, prod(...)).  torch .view(B, -1) on contiguous
        input is a metadata-only row-major reshape, so no kernel is needed."""
        return jnp.reshape(x, (x.shape[0], -1))

    def flatten_materialize(self, x: jax.Array) -> jax.Array:
        """Same result as flatten(), but forces an HBM materialization through a
        large-tile, lane/sublane-dense Pallas copy (kept as a fusion site for
        derived heads that implement a real forward())."""
        b = x.shape[0]
        n = 1
        for d in x.shape[1:]:
            n *= d
        x2 = jnp.reshape(x, (b, n))  # row-major, matches torch .view

        slab = _pick_slab(b * n)
        if slab is None:
            # Ragged feature dim (not a multiple of 128 lanes): skip the copy
            # kernel entirely — avoids a monolithic whole-array VMEM block
            # (critical on v7x's 64 MiB VMEM) and masked partial stores.
            return x2

        rows, cols, row_tile = slab
        xs = jnp.reshape(x2, (rows, cols))  # metadata-only re-view of the flat buffer

        out = pl.pallas_call(
            _copy_kernel,
            out_shape=jax.ShapeDtypeStruct((rows, cols), x.dtype),
            grid_spec=pltpu.PrefetchScalarGridSpec(
                num_scalar_prefetch=0,
                grid=(rows // row_tile,),
                in_specs=[pl.BlockSpec((row_tile, cols), lambda i: (i, 0))],
                out_specs=pl.BlockSpec((row_tile, cols), lambda i: (i, 0)),
            ),
            compiler_params=pltpu.CompilerParams(
                dimension_semantics=("parallel",),
            ),
        )(xs)

        return jnp.reshape(out, (b, n))  # metadata-only back to (B, N)


if __name__ == "__main__":
    key = jax.random.PRNGKey(0)
    B, C, H, W = 2, 4, 16, 16  # NCHW, like the PyTorch module's inputs
    x = jax.random.normal(key, (B, C, H, W), dtype=jnp.float32)

    head = BaseFusionHeadPallas(feature_dim=C * H * W)

    # Recommended path: zero-cost metadata flatten.
    out_fast = jax.block_until_ready(head.flatten(x))

    # Kernel path: materializing flatten via the large-tile Pallas copy.
    out_kernel = jax.block_until_ready(head.flatten_materialize(x))

    ref = jnp.reshape(x, (B, -1))
    assert out_fast.shape == (B, C * H * W), out_fast.shape
    assert out_kernel.shape == (B, C * H * W), out_kernel.shape
    assert out_kernel.dtype == x.dtype
    assert bool(jnp.array_equal(out_fast, ref)), "flatten (fast path) mismatch"
    assert bool(jnp.array_equal(out_kernel, ref)), "flatten (kernel path) mismatch"

    print("KERNEL_OK")
</pallas_src>

<mosaic_0001>
module attributes {stable_mosaic.version = 11 : i64} {
  func.func @_copy_kernel(%arg0: i32, %arg1: memref<8x256xf32, #tpu.memory_space<vmem>>, %arg2: memref<8x256xf32, #tpu.memory_space<vmem>>) attributes {dimension_semantics = [#tpu.dimension_semantics<parallel>], iteration_bounds = array<i64: 1>, scalar_prefetch = 0 : i64, scratch_operands = 0 : i64, tpu.core_type = #tpu.core_type<tc>, window_params = [{transform_indices = @transform_0, window_bounds = array<i64: 8, 256>}, {transform_indices = @transform_1, window_bounds = array<i64: 8, 256>}]} {
    %c0 = arith.constant 0 : index
    %c0_0 = arith.constant 0 : index
    %0 = vector.load %arg1[%c0, %c0_0] : memref<8x256xf32, #tpu.memory_space<vmem>>, vector<8x256xf32>
    %c0_1 = arith.constant 0 : index
    %c0_2 = arith.constant 0 : index
    %1 = vector.load %arg2[%c0_1, %c0_2] : memref<8x256xf32, #tpu.memory_space<vmem>>, vector<8x256xf32>
    tpu.vector_store %arg2[%c0_1, %c0_2], %0 {strides = array<i32>} : memref<8x256xf32, #tpu.memory_space<vmem>>, vector<8x256xf32>,
    return
  }
  func.func @transform_0(%arg0: i32) -> (i32, i32) {
    %c0_i32 = arith.constant 0 : i32
    %c0_i32_0 = arith.constant 0 : i32
    return %arg0, %c0_i32 : i32, i32
  }
  func.func @transform_1(%arg0: i32) -> (i32, i32) {
    %c0_i32 = arith.constant 0 : i32
    %c0_i32_0 = arith.constant 0 : i32
    return %arg0, %c0_i32 : i32, i32
  }
}

</mosaic_0001>

<bundles_post_ra>
// kernel: tpu_custom_call.1
= control target key start
LH: loop header
LB: loop body
LE: loop exit
PB: predicated region body
PF: predicated region fallthrough
CT: control target
= control target key end

     0   :  { %6 = vsyncpa [#allocation3], 0  ;;  %s104_s0 = inlined_call_operand.hbm [shape: f32[8,256], index: 0, kind: input, shape index: {}]   ;;  %s105_s1 = inlined_call_operand.hbm [shape: f32[8,256], index: 1, kind: output, shape index: {}]  }
   0x1   :  { %7 = vsyncpa [#allocation4], 0  ;;  %s86_s6 = smov [#allocation2]  }
   0x2   :  { %s14_s7 = sshll.u32 %s86_s6, 4  ;;  %s15_s7 = int_to_ptr.vmem [resolvable:$true] %s14_s7 }
   0x3   :  { %s50_s8 = scalar_lea.vmem %s15_s7, 256  ;;  %p55_p1 = scmp.lt.s32.totalorder %s15_s7, %s15_s7 }
   0x4   :  { %p51_p0 = scmp.ne.s32.totalorder %s15_s7, %s50_s8  ;;  %p56_p2 = scmp.lt.s32.totalorder %s50_s8, %s50_s8 }
   0x6   :  { %p57_p3 = por %p56_p2, %p55_p1 }
   0x8   :  { %p58_p4 = pnand %p57_p3, %p51_p0 }
   0xa   :  { %61 = shalt.err (!%p58_p4)
}
   0xb   :  { %17 = dma.hbm_to_vmem [thread:$0]  %s104_s0, 256, %s15_s7, [#allocation3]  }
   0xc   :  { %82 = dma.done.wait [#allocation3], 256  }
   0xd   :  { %83 = vsyncadd [#allocation3], 4294967040  ;;  %s87_s11 = smov [#allocation5]   ;;  %v21_v0 = vld [vmem:[#allocation2] sm:$0xff]  ;;  %v22_v1 = vld [vmem:[#allocation2 + $0x8] sm:$0xff] }
   0xe   :  { %s31_s12 = sshll.u32 %s87_s11, 4  ;;  %23 = vst [vmem:[#allocation5] sm:$0xff] %v21_v0  ;;  %24 = vst [vmem:[#allocation5 + $0x8] sm:$0xff] %v22_v1  ;;  %s32_s12 = int_to_ptr.vmem [resolvable:$true] %s31_s12 }
   0xf   :  { %s62_s13 = scalar_lea.vmem %s32_s12, 256  ;;  %p67_p6 = scmp.lt.s32.totalorder %s32_s12, %s32_s12 }
  0x10   :  { %p63_p5 = scmp.ne.s32.totalorder %s32_s12, %s62_s13  ;;  %p68_p7 = scmp.lt.s32.totalorder %s62_s13, %s62_s13 }
  0x12   :  { %p69_p8 = por %p68_p7, %p67_p6 }
  0x14   :  { %p70_p9 = pnand %p69_p8, %p63_p5 }
  0x16   :  { %73 = shalt.err (!%p70_p9)
}
  0x17   :  { %34 = dma.vmem_to_hbm [thread:$0]  %s32_s12, 256, %s105_s1, [#allocation4]  }
  0x18   :  { %84 = dma.done.wait [#allocation4], 256  }
  0x19   :  { %85 = vsyncadd [#allocation4], 4294967040 }
  0x1a   :  { %38 = vsyncpa [#allocation3], 1 }
  0x1b   :  { %39 = vsyncpa [#allocation4], 1 }

</bundles_post_ra>
